<compile_context>
chip_gen: v7x
topology: tpu7x:2x2x1
jax: 0.10.0
libtpu: 0.0.40
codegen_flags: <defaults>
</compile_context>

<pallas_src>
import jax
import jax.numpy as jnp
from jax.experimental import pallas as pl
from jax.experimental.pallas import tpu as pltpu

LANE = 128


def _make_kernel(*, tm, sub, n_sub, acc_rows, rows, spc, needs_mask):
    """Partial-sum kernel for sum((1 - x)^2); all sizes are trace-time consts."""

    def kernel(x_ref, out_ref):
        c = pl.program_id(0)          # core-split index ("parallel")
        i = pl.program_id(1)          # row-block index within the split ("arbitrary")
        blk = c * spc + i             # logical (unclamped) row-block index

        @pl.when(i == 0)
        def _():
            out_ref[...] = jnp.zeros_like(out_ref)

        def accum_chunk(s, masked):
            if n_sub == 1:
                v = x_ref[...]
            else:
                off = pl.multiple_of(s * sub, sub)
                v = x_ref[pl.ds(off, sub), :]
            d = jnp.float32(1.0) - v.astype(jnp.float32)   # upcast in-kernel
            sq = d * d
            if masked:
                # Mask rows past the end of the slab (partial last block or a
                # clamped duplicate overflow block). Row-index compare only:
                # no int32 overflow for any realistic n.
                row = jax.lax.broadcasted_iota(jnp.int32, (sub, LANE), 0)
                grow = blk * tm + s * sub + row
                sq = jnp.where(grow < rows, sq, jnp.float32(0.0))
            # acc_rows-row accumulator = acc_rows//8 independent vreg slots -> ILP.
            out_ref[...] += sq.reshape(-1, acc_rows, LANE).sum(axis=0)

        def run(masked):
            if n_sub == 1:
                accum_chunk(0, masked)
            else:
                def body(s, carry):
                    accum_chunk(s, masked)
                    return carry
                jax.lax.fori_loop(0, n_sub, body, 0)

        if needs_mask:
            @pl.when(blk * tm + tm <= rows)     # fully in-bounds block
            def _():
                run(False)

            @pl.when(blk * tm + tm > rows)      # partial / duplicated overflow block
            def _():
                run(True)
        else:
            run(False)

    return kernel


def generator_loss(gen_discriminator_out, *, block_bytes=4 * 1024 * 1024,
                   row_tile=None, sub_rows=None):
    """Pallas TPU implementation of mean((1 - x)^2) over all elements."""
    x = gen_discriminator_out
    n = int(x.size)
    if n == 0:
        return jnp.float32(jnp.nan)
    flat = x.reshape(-1)              # free for contiguous JAX arrays

    rows = n // LANE
    rem = n - rows * LANE
    inv_n = 1.0 / float(n)

    # Ragged tail (< 128 elements) folded in here: no O(n) pad copy.
    tail_sum = jnp.float32(0.0)
    if rem:
        tail = flat[rows * LANE:].astype(jnp.float32)
        tail_sum = jnp.sum((jnp.float32(1.0) - tail) ** 2)

    if rows == 0:                      # everything fits in the tail
        out = tail_sum * jnp.float32(inv_n)
        return out.astype(x.dtype) if jnp.issubdtype(x.dtype, jnp.floating) else out

    # Lane-dense slab over the first rows*128 elements (identity when rem == 0).
    slab = flat[:rows * LANE].reshape(rows, LANE)

    itemsize = jnp.dtype(x.dtype).itemsize
    # Byte-budget row tile: ~4 MiB of input per block (double-buffered 8 MiB),
    # fits every generation's scoped-VMEM default.
    if row_tile is None:
        tm = min(rows, max(8, int(block_bytes) // (LANE * itemsize)))
    else:
        tm = min(rows, int(row_tile))
    if tm < rows:
        tm = max(8, (tm // 8) * 8)     # sub-array blocks must be sublane aligned

    # In-block sub-chunking bounds f32 intermediates in VMEM regardless of tm.
    sub = 1024 if sub_rows is None else int(sub_rows)
    sub = min(sub, tm)
    if sub <= 0 or tm % sub != 0 or sub % 8 != 0:
        sub = tm
    n_sub = tm // sub

    if sub % 64 == 0:
        acc_rows = 64                  # 8 independent (8,128) accumulator slots
    elif sub % 8 == 0:
        acc_rows = 8
    else:
        acc_rows = 1

    total_blocks = pl.cdiv(rows, tm)
    # 2-way split engages both TensorCores on v7x; harmless on 1-TC chips.
    nc = 2 if total_blocks >= 2 else 1
    spc = pl.cdiv(total_blocks, nc)
    needs_mask = (total_blocks * tm != rows) or (nc * spc != total_blocks)

    kernel = _make_kernel(tm=tm, sub=sub, n_sub=n_sub, acc_rows=acc_rows,
                          rows=rows, spc=spc, needs_mask=needs_mask)

    def in_index(c, i):
        # Clamp overflow blocks to the last real block; they are fully masked.
        return (jnp.minimum(c * spc + i, total_blocks - 1), 0)

    partials = pl.pallas_call(
        kernel,
        out_shape=jax.ShapeDtypeStruct((nc, acc_rows, LANE), jnp.float32),
        grid=(nc, spc),
        in_specs=[pl.BlockSpec((tm, LANE), in_index)],
        out_specs=pl.BlockSpec((None, acc_rows, LANE), lambda c, i: (c, 0, 0)),
        compiler_params=pltpu.CompilerParams(
            dimension_semantics=("parallel", "arbitrary"),
            vmem_limit_bytes=32 * 1024 * 1024,
        ),
        cost_estimate=pl.CostEstimate(
            flops=3 * n, transcendentals=0,
            bytes_accessed=rows * LANE * itemsize + nc * acc_rows * LANE * 4,
        ),
    )(slab)

    # Final cross-lane reduce + 1/n scaling in the wrapper (tiny).
    out = (jnp.sum(partials) + tail_sum) * jnp.float32(inv_n)
    if jnp.issubdtype(x.dtype, jnp.floating):
        out = out.astype(x.dtype)
    return out


if __name__ == "__main__":
    def ref_loss(v):
        return jnp.mean((1.0 - v.astype(jnp.float32)) ** 2)

    # Primary: typical discriminator output on generated images (B, C, H, W).
    x = jax.random.uniform(jax.random.PRNGKey(0), (2, 4, 16, 16), dtype=jnp.float32)
    loss = generator_loss(x)
    jax.block_until_ready(loss)
    assert jnp.allclose(loss, ref_loss(x), rtol=1e-5, atol=1e-6), (loss, ref_loss(x))

    # Ragged n (n % 128 != 0): kernel over the lane-dense prefix + jnp tail.
    x2 = jax.random.uniform(jax.random.PRNGKey(1), (3, 5, 17), dtype=jnp.float32)
    assert jnp.allclose(generator_loss(x2), ref_loss(x2), rtol=1e-5, atol=1e-6)

    # Tiny input (< 128 elements): tail-only path, no kernel launch.
    x3 = jax.random.uniform(jax.random.PRNGKey(2), (3, 5, 7), dtype=jnp.float32)
    assert jnp.allclose(generator_loss(x3), ref_loss(x3), rtol=1e-5, atol=1e-6)

    # Partial last row-block + 2-way core split (masked path, nc == 2).
    x4 = jax.random.normal(jax.random.PRNGKey(3), (12, 128), dtype=jnp.float32)
    assert jnp.allclose(generator_loss(x4, row_tile=8), ref_loss(x4),
                        rtol=1e-5, atol=1e-5)

    # Odd block count with the 2-way split: clamped duplicate block fully masked.
    x5 = jax.random.normal(jax.random.PRNGKey(4), (24, 128), dtype=jnp.float32)
    assert jnp.allclose(generator_loss(x5, row_tile=8), ref_loss(x5),
                        rtol=1e-5, atol=1e-5)

    # In-block sub-chunk fori_loop path (unmasked + masked chunks).
    x6 = jax.random.normal(jax.random.PRNGKey(5), (56, 128), dtype=jnp.float32)
    assert jnp.allclose(generator_loss(x6, row_tile=32, sub_rows=8), ref_loss(x6),
                        rtol=1e-5, atol=1e-5)

    print("KERNEL_OK")
</pallas_src>

<mosaic_0001>
module attributes {stable_mosaic.version = 11 : i64} {
  func.func @kernel(%arg0: i32, %arg1: i32, %arg2: memref<16x128xf32, #tpu.memory_space<vmem>>, %arg3: memref<1x8x128xf32, #tpu.memory_space<vmem>>) attributes {dimension_semantics = [#tpu.dimension_semantics<parallel>, #tpu.dimension_semantics<arbitrary>], iteration_bounds = array<i64: 1, 1>, scalar_prefetch = 0 : i64, scratch_operands = 0 : i64, tpu.core_type = #tpu.core_type<tc>, window_params = [{transform_indices = @transform_0, window_bounds = array<i64: 16, 128>}, {transform_indices = @transform_1, window_bounds = array<i64: 1, 8, 128>}]} {
    %c0_i32 = arith.constant 0 : i32
    %0 = arith.cmpi eq, %arg1, %c0_i32 : i32
    %1 = arith.extui %0 : i1 to i32
    %c0_i32_0 = arith.constant 0 : i32
    %2 = arith.cmpi ne, %1, %c0_i32_0 : i32
    scf.if %2 {
      %cst_9 = arith.constant 0.000000e+00 : f32
      %15 = vector.broadcast %cst_9 : f32 to vector<8x128xf32>
      %c0_10 = arith.constant 0 : index
      %c0_11 = arith.constant 0 : index
      %c0_12 = arith.constant 0 : index
      %16 = vector.load %arg3[%c0_10, %c0_11, %c0_12] : memref<1x8x128xf32, #tpu.memory_space<vmem>>, vector<1x8x128xf32>
      %17 = vector.shape_cast %16 : vector<1x8x128xf32> to vector<8x128xf32>
      %18 = vector.shape_cast %15 : vector<8x128xf32> to vector<1x8x128xf32>
      tpu.vector_store %arg3[%c0_10, %c0_11, %c0_12], %18 {strides = array<i32>} : memref<1x8x128xf32, #tpu.memory_space<vmem>>, vector<1x8x128xf32>,
    } else {
    }
    %c0 = arith.constant 0 : index
    %c0_1 = arith.constant 0 : index
    %3 = vector.load %arg2[%c0, %c0_1] : memref<16x128xf32, #tpu.memory_space<vmem>>, vector<16x128xf32>
    %cst = arith.constant 1.000000e+00 : f32
    %4 = vector.broadcast %cst : f32 to vector<16x128xf32>
    %5 = arith.subf %4, %3 : vector<16x128xf32>
    %6 = arith.mulf %5, %5 : vector<16x128xf32>
    %c0_2 = arith.constant 0 : index
    %c0_3 = arith.constant 0 : index
    %c0_4 = arith.constant 0 : index
    %7 = vector.load %arg3[%c0_2, %c0_3, %c0_4] : memref<1x8x128xf32, #tpu.memory_space<vmem>>, vector<1x8x128xf32>
    %8 = vector.shape_cast %7 : vector<1x8x128xf32> to vector<8x128xf32>
    %9 = vector.shape_cast %6 : vector<16x128xf32> to vector<2x8x128xf32>
    %cst_5 = arith.constant dense<0.000000e+00> : vector<8x128xf32>
    %10 = vector.multi_reduction <add>, %9, %cst_5 [0] : vector<2x8x128xf32> to vector<8x128xf32>
    %11 = arith.addf %8, %10 : vector<8x128xf32>
    %c0_6 = arith.constant 0 : index
    %c0_7 = arith.constant 0 : index
    %c0_8 = arith.constant 0 : index
    %12 = vector.load %arg3[%c0_6, %c0_7, %c0_8] : memref<1x8x128xf32, #tpu.memory_space<vmem>>, vector<1x8x128xf32>
    %13 = vector.shape_cast %12 : vector<1x8x128xf32> to vector<8x128xf32>
    %14 = vector.shape_cast %11 : vector<8x128xf32> to vector<1x8x128xf32>
    tpu.vector_store %arg3[%c0_6, %c0_7, %c0_8], %14 {strides = array<i32>} : memref<1x8x128xf32, #tpu.memory_space<vmem>>, vector<1x8x128xf32>,
    return
  }
  func.func @transform_0(%arg0: i32, %arg1: i32) -> (i32, i32) {
    %c1_i32 = arith.constant 1 : i32
    %0 = arith.muli %arg0, %c1_i32 : i32
    %1 = arith.addi %0, %arg1 : i32
    %c0_i32 = arith.constant 0 : i32
    %2 = arith.minsi %1, %c0_i32 : i32
    %c0_i32_0 = arith.constant 0 : i32
    %c0_i32_1 = arith.constant 0 : i32
    return %2, %c0_i32_0 : i32, i32
  }
  func.func @transform_1(%arg0: i32, %arg1: i32) -> (i32, i32, i32) {
    %c0_i32 = arith.constant 0 : i32
    %c0_i32_0 = arith.constant 0 : i32
    %c0_i32_1 = arith.constant 0 : i32
    return %arg0, %c0_i32, %c0_i32_0 : i32, i32, i32
  }
}

</mosaic_0001>

<bundles_post_ra>
// kernel: tpu_custom_call.1
= control target key start
LH: loop header
LB: loop body
LE: loop exit
PB: predicated region body
PF: predicated region fallthrough
CT: control target
= control target key end

     0   :  { %6 = vsyncpa [#allocation3], 0  ;;  %s156_s0 = inlined_call_operand.hbm [shape: f32[16,128], index: 0, kind: input, shape index: {}]   ;;  %s157_s1 = inlined_call_operand.hbm [shape: f32[1,8,128], index: 1, kind: output, shape index: {}]  }
   0x1   :  { %7 = vsyncpa [#allocation4], 0  ;;  %s118_s6 = smov [#allocation2]   ;;  %s70_s10 = scalar_lea.hbm %s156_s0, 256 }
   0x2   :  { %s19_s7 = sshll.u32 %s118_s6, 4  ;;  %p71_p0 = scmp.ne.s32.totalorder %s156_s0, %s70_s10  ;;  %s20_s7 = int_to_ptr.vmem [resolvable:$true] %s19_s7 }
   0x3   :  { %p74_p1 = scmp.lt.u32.totalorder %s70_s10, %s156_s0 }
   0x5   :  { %p76_p2 = pnand %p74_p1, %p71_p0 }
   0x7   :  { %79 = shalt.err (!%p76_p2)
}
   0x8   :  { %s80_s15 = scalar_lea.vmem %s20_s7, 256  ;;  %p85_p4 = scmp.lt.s32.totalorder %s20_s7, %s20_s7 }
   0x9   :  { %p81_p3 = scmp.ne.s32.totalorder %s20_s7, %s80_s15  ;;  %p86_p5 = scmp.lt.s32.totalorder %s80_s15, %s80_s15 }
   0xb   :  { %p87_p6 = por %p86_p5, %p85_p4 }
   0xd   :  { %p88_p7 = pnand %p87_p6, %p81_p3 }
   0xf   :  { %91 = shalt.err (!%p88_p7)
}
  0x10   :  { %s119_s16 = smov 128   ;;  %s120_s17 = smov 8  }
  0x11   :  { %25 = dma.hbm_to_vmem [thread:$0]  %s156_s0, 256, %s20_s7, [#allocation3], %s119_s16, %s119_s16, %s120_s17  }
  0x12   :  { %114 = dma.done.wait [#allocation3], 256  }
  0x13   :  { %115 = vsyncadd [#allocation3], 4294967040  ;;  %v38_v0 = vld [vmem:[#allocation2] sm:$0xff]  ;;  %v39_v1 = vld [vmem:[#allocation2 + $0x8] sm:$0xff]  ;;  %s121_s20 = smov [#allocation5]  }
  0x14   :  { %v40_v2 = vsub.f32 1.0, %v38_v0  ;;  %v41_v3 = vsub.f32 1.0, %v39_v1  ;;  %s54_s21 = sshll.u32 %s121_s20, 4  ;;  %s55_s21 = int_to_ptr.vmem [resolvable:$true] %s54_s21 }
  0x15   :  { %s92_s22 = scalar_lea.vmem %s55_s21, 128  ;;  %p97_p9 = scmp.lt.s32.totalorder %s55_s21, %s55_s21 }
  0x16   :  { %v42_v4 = vmul.f32 %v40_v2, %v40_v2  ;;  %v43_v5 = vmul.f32 %v41_v3, %v41_v3  ;;  %p93_p8 = scmp.ne.s32.totalorder %s55_s21, %s92_s22  ;;  %p98_p10 = scmp.lt.s32.totalorder %s92_s22, %s92_s22 }
  0x18   :  { %v45_v6 = vadd.f32 %v43_v5, %v42_v4  ;;  %p99_p11 = por %p98_p10, %p97_p9 }
  0x1a   :  { %47 = vst [vmem:[#allocation5] sm:$0xff] %v45_v6  ;;  %p100_p12 = pnand %p99_p11, %p93_p8 }
  0x1c   :  { %103 = shalt.err (!%p100_p12)
}
  0x1d   :  { %s104_s24 = scalar_lea.hbm %s157_s1, 128 }
  0x1e   :  { %p105_p13 = scmp.ne.s32.totalorder %s157_s1, %s104_s24  ;;  %p108_p0 = scmp.lt.u32.totalorder %s104_s24, %s157_s1 }
  0x20   :  { %p110_p1 = pnand %p108_p0, %p105_p13 }
  0x22   :  { %113 = shalt.err (!%p110_p1)
}
  0x23   :  { %57 = dma.vmem_to_hbm [thread:$0]  %s55_s21, 128, %s157_s1, [#allocation4]  }
  0x24   :  { %116 = dma.done.wait [#allocation4], 128  }
  0x25   :  { %117 = vsyncadd [#allocation4], 4294967168 }
  0x26   :  { %61 = vsyncpa [#allocation3], 1 }
  0x27   :  { %62 = vsyncpa [#allocation4], 1 }

</bundles_post_ra>
